<compile_context>
chip_gen: v6e
topology: v6e:2x2x1
jax: 0.10.0
libtpu: 0.0.40
codegen_flags: <defaults>
</compile_context>

<pallas_src>
import functools

import jax
import jax.numpy as jnp
from jax import lax
from jax.experimental import pallas as pl
from jax.experimental.pallas import tpu as pltpu


# ----------------------------- Pallas kernel --------------------------------
def dense_model_kernel(idxT_ref, xc_ref, twT_ref, w1cT_ref, b1_ref,
                       w2T_ref, b2_ref, woT_ref, bo_ref, o_ref,
                       *, cat_offsets, compute_dtype):
    """Fused embedding-gather + (BN-folded) MLP forward, feature-major layout."""
    C_total = twT_ref.shape[1]
    TB = idxT_ref.shape[1]

    # --- transposed multi-hot encoding of the categorical indices ------------
    # mhT[c, i] = 1 iff c == offset_j + idx[i, j] for some column j; offsets are
    # disjoint, so a boolean OR + one cast is exact.
    #   twT @ mhT == W1_emb @ concat_j(Emb_j[idx_j])^T   (exact gather)
    # NOTE: out-of-range indices contribute zero (no matching one-hot row)
    # instead of raising like torch.nn.Embedding.
    idxT = idxT_ref[...]                                      # (n_cat, TB) int32
    iota = lax.broadcasted_iota(jnp.int32, (C_total, TB), 0)
    hot = iota == (idxT[0:1, :] + cat_offsets[0])
    for j in range(1, len(cat_offsets)):
        hot = hot | (iota == (idxT[j:j + 1, :] + cat_offsets[j]))
    mhT = hot.astype(jnp.float32).astype(compute_dtype)       # 0/1: exact in bf16

    # Continuous features arrive f32 and batch-major; cast in-kernel (free VPU
    # slack under the matmuls) and contract their feature axis directly.
    xc = xc_ref[...].astype(compute_dtype)                    # (TB, n_cont)

    # --- layer 1: fused embedding table + BN-folded continuous slice ---------
    h1 = (jnp.dot(twT_ref[...], mhT, preferred_element_type=jnp.float32)
          + lax.dot_general(w1cT_ref[...], xc,
                            (((1,), (1,)), ((), ())),          # A @ B^T
                            preferred_element_type=jnp.float32)
          + b1_ref[...])
    h1 = jnp.maximum(h1, 0.0)                                  # (H1, TB) f32

    # --- layer 2 ---------------------------------------------------------------
    h2 = jnp.dot(w2T_ref[...], h1.astype(compute_dtype),
                 preferred_element_type=jnp.float32) + b2_ref[...]
    h2 = jnp.maximum(h2, 0.0)                                  # (H2, TB)

    # --- output layer: (O, TB), lane-dense, zero padding bytes -----------------
    out = jnp.dot(woT_ref[...], h2.astype(compute_dtype),
                  preferred_element_type=jnp.float32) + bo_ref[...]
    o_ref[...] = out.astype(o_ref.dtype)


# ------------------------------- wrapper -------------------------------------
def _auto_tile_rows(batch, max_tile=2048):
    # Big tiles amortize the ~0.35 us per-grid-step overhead, but keep >=2 grid
    # steps so ("parallel",) can shard the batch across v7x's two TensorCores.
    # The batch tile is the lane axis of every block -> multiple of 128.
    target = min(max_tile, max(128, -(-batch // 2)))
    return ((target + 127) // 128) * 128


def dense_model_forward(idx, x_cont, twT, w1cT, b1, w2T, b2, woT, bo,
                        *, cat_offsets, tile_rows=None,
                        compute_dtype=jnp.bfloat16):
    """Eval-mode DenseModel forward.  Returns (B, O) float32."""
    B, n_cat = idx.shape
    n_cont = x_cont.shape[1]
    H1, C_total = twT.shape
    H2 = w2T.shape[0]
    O = woT.shape[0]

    TB = tile_rows if tile_rows is not None else _auto_tile_rows(B)
    assert TB % 128 == 0
    n_steps = -(-B // TB)
    B_pad = n_steps * TB

    # Weights -> compute dtype (one-time, parameters only); biases stay f32.
    # Activations (x_cont) are NOT cast or relaid out in the wrapper.
    twT = twT.astype(compute_dtype)
    w1cT = w1cT.astype(compute_dtype)
    w2T = w2T.astype(compute_dtype)
    woT = woT.astype(compute_dtype)

    # Indices feature-major (tiny int32 array) so the kernel can sublane-
    # broadcast each categorical column against the one-hot iota.
    idxT = idx.astype(jnp.int32).T                            # (n_cat, B)
    if B_pad != B:
        idxT = jnp.pad(idxT, ((0, 0), (0, B_pad - B)))
        x_cont = jnp.pad(x_cont, ((0, B_pad - B), (0, 0)))

    col_tiled = lambda shape: pl.BlockSpec(shape, lambda i: (0, i))  # batch on lanes
    row_tiled = lambda shape: pl.BlockSpec(shape, lambda i: (i, 0))  # batch on sublanes
    resident = lambda shape: pl.BlockSpec(shape, lambda i: (0, 0))   # DMA'd once

    kernel = functools.partial(dense_model_kernel,
                               cat_offsets=tuple(int(o) for o in cat_offsets),
                               compute_dtype=compute_dtype)

    outT = pl.pallas_call(
        kernel,
        out_shape=jax.ShapeDtypeStruct((O, B_pad), jnp.float32),
        grid=(n_steps,),
        in_specs=[
            col_tiled((n_cat, TB)),       # categorical indices (int32, transposed)
            row_tiled((TB, n_cont)),      # continuous features (f32, as given)
            resident((H1, C_total)),      # fused embedding->W1 table (feature-major)
            resident((H1, n_cont)),       # BN-folded continuous slice of W1
            resident((H1, 1)),            # b1 (BN shift folded in)
            resident((H2, H1)),           # W2 (torch (out,in) layout)
            resident((H2, 1)),            # b2
            resident((O, H2)),            # Wo
            resident((O, 1)),             # bo
        ],
        out_specs=col_tiled((O, TB)),
        compiler_params=pltpu.CompilerParams(
            dimension_semantics=("parallel",)),
    )(idxT, x_cont, twT, w1cT, b1, w2T, b2, woT, bo)

    # (O, B_pad) -> (B, O): ~16 KB transpose outside the kernel, drop padding.
    return outT.T[:B]


# ------------------------- parameter construction ---------------------------
def kaiming_normal(key, fan_out, fan_in):
    # torch.nn.init.kaiming_normal (a=0, fan_in mode): std = sqrt(2/fan_in)
    std = (2.0 / fan_in) ** 0.5
    return jax.random.normal(key, (fan_out, fan_in), jnp.float32) * std


def linear_bias(key, fan_out, fan_in):
    # PyTorch nn.Linear default bias init: U(-1/sqrt(fan_in), 1/sqrt(fan_in))
    bound = 1.0 / (fan_in ** 0.5)
    return jax.random.uniform(key, (fan_out,), jnp.float32, -bound, bound)


def make_embedding(key, n_categories, dim):
    # initialize_embedding: uniform(-sc, sc) with sc = 2/(dim+1)
    sc = 2.0 / (dim + 1)
    return jax.random.uniform(key, (n_categories, dim), jnp.float32, -sc, sc)


if __name__ == "__main__":
    # --- model hyperparameters (consistent with the module) ---
    embedding_sizes = [(10, 4), (8, 4)]          # (n_categories, embedding_dim)
    n_continuous = 8
    layer_sizes = [32, 16]
    output_size = 4
    batch = 1024                                 # 2 grid steps of 512 rows

    n_embedding = sum(d for _, d in embedding_sizes)
    in_features = n_embedding + n_continuous     # 16
    H1, H2 = layer_sizes

    key = jax.random.PRNGKey(0)
    keys = jax.random.split(key, 16)

    # embeddings
    emb_tables = [make_embedding(keys[i], c, d)
                  for i, (c, d) in enumerate(embedding_sizes)]

    # linear layers, PyTorch-native (out_features, in_features) == feature-major
    w1 = kaiming_normal(keys[4], H1, in_features)     # (32, 16)
    b1 = linear_bias(keys[5], H1, in_features)
    w2 = kaiming_normal(keys[6], H2, H1)              # (16, 32)
    b2 = linear_bias(keys[7], H2, H1)
    wo = kaiming_normal(keys[8], output_size, H2)     # (4, 16)
    bo = linear_bias(keys[9], output_size, H2)

    # continuous BatchNorm1d (eval mode, fresh running stats):
    #   y = (x - mean) / sqrt(var + eps) * gamma + beta
    eps = 1e-5
    bn_gamma = jnp.ones((n_continuous,), jnp.float32)
    bn_beta = jnp.zeros((n_continuous,), jnp.float32)
    bn_mean = jnp.zeros((n_continuous,), jnp.float32)
    bn_var = jnp.ones((n_continuous,), jnp.float32)
    bn_scale = bn_gamma / jnp.sqrt(bn_var + eps)
    bn_shift = bn_beta - bn_mean * bn_scale

    # ---- one-time parameter folding (exact in eval mode) ----
    w1_emb = w1[:, :n_embedding]                 # columns fed by embedding features
    w1_cont = w1[:, n_embedding:]                # columns fed by continuous features

    # fuse each embedding table with its slice of W1 (feature-major):
    #   twT @ multi_hot^T == W1_emb @ concat_j(Emb_j[idx_j])^T
    twT_parts, cat_offsets, col, row = [], [], 0, 0
    for tbl in emb_tables:
        d = tbl.shape[1]
        twT_parts.append(w1_emb[:, col:col + d] @ tbl.T)   # (H1, C_j)
        cat_offsets.append(row)
        col += d
        row += tbl.shape[0]
    twT = jnp.concatenate(twT_parts, axis=1)     # (H1, sum C_j)

    # fold BN affine into the continuous slice of W1 and into b1
    w1cT = w1_cont * bn_scale[None, :]           # (H1, n_cont)
    b1f = b1 + w1_cont @ bn_shift                # (H1,)

    b1_col, b2_col, bo_col = b1f[:, None], b2[:, None], bo[:, None]

    # --- example inputs ---
    input_continuous = jax.random.normal(keys[10], (batch, n_continuous), jnp.float32)
    input_categorical = jnp.stack(
        [jax.random.randint(keys[11], (batch,), 0, embedding_sizes[0][0]),
         jax.random.randint(keys[12], (batch,), 0, embedding_sizes[1][0])],
        axis=1).astype(jnp.int32)                # (batch, 2)

    run = functools.partial(dense_model_forward, cat_offsets=cat_offsets)

    # f32 operands: tight check against the module's eval forward
    out_f32 = run(input_categorical, input_continuous,
                  twT, w1cT, b1_col, w2, b2_col, wo, bo_col,
                  compute_dtype=jnp.float32)
    out_f32 = jax.block_until_ready(out_f32)

    # bf16 matmul operands: the performance path (halved weight/activation bytes)
    out_bf16 = run(input_categorical, input_continuous,
                   twT, w1cT, b1_col, w2, b2_col, wo, bo_col,
                   compute_dtype=jnp.bfloat16)
    out_bf16 = jax.block_until_ready(out_bf16)

    # --- pure-JAX reference mirroring the original PyTorch forward order ---
    emb_cols = [jnp.take(tbl, input_categorical[:, i], axis=0)
                for i, tbl in enumerate(emb_tables)]
    x_ref = jnp.concatenate(
        emb_cols + [input_continuous * bn_scale + bn_shift], axis=1)
    h = jnp.maximum(x_ref @ w1.T + b1, 0.0)
    h = jnp.maximum(h @ w2.T + b2, 0.0)
    ref = h @ wo.T + bo

    assert out_f32.shape == (batch, output_size)
    assert out_bf16.shape == (batch, output_size)
    assert jnp.allclose(out_f32, ref, atol=1e-4, rtol=1e-4), "f32 mismatch vs reference"
    # bf16 operand rounding -> looser tolerance
    assert jnp.allclose(out_bf16, ref, atol=1e-1, rtol=1e-1), "bf16 mismatch vs reference"

    # TODO(synk): training-mode BatchNorm / Dropout (batch statistics, RNG masks)
    # are not implemented; this kernel covers the eval-mode forward only.
    # TODO(synk): for large vocabularies (C_total >~ 1e3) replace the multi-hot
    # matmul with a scalar-prefetch row gather (PrefetchScalarGridSpec + pl.Element);
    # at C_total ~ 18 the fused-table matmul is the faster choice.
    print("KERNEL_OK")
</pallas_src>

<mosaic_0001>
module attributes {stable_mosaic.version = 11 : i64} {
  func.func @dense_model_kernel(%arg0: i32, %arg1: memref<2x512xi32, #tpu.memory_space<vmem>>, %arg2: memref<512x8xf32, #tpu.memory_space<vmem>>, %arg3: memref<32x18xf32, #tpu.memory_space<vmem>>, %arg4: memref<32x8xf32, #tpu.memory_space<vmem>>, %arg5: memref<32x1xf32, #tpu.memory_space<vmem>>, %arg6: memref<16x32xf32, #tpu.memory_space<vmem>>, %arg7: memref<16x1xf32, #tpu.memory_space<vmem>>, %arg8: memref<4x16xf32, #tpu.memory_space<vmem>>, %arg9: memref<4x1xf32, #tpu.memory_space<vmem>>, %arg10: memref<4x512xf32, #tpu.memory_space<vmem>>) attributes {dimension_semantics = [#tpu.dimension_semantics<parallel>], iteration_bounds = array<i64: 2>, scalar_prefetch = 0 : i64, scratch_operands = 0 : i64, tpu.core_type = #tpu.core_type<tc>, window_params = [{transform_indices = @transform_0, window_bounds = array<i64: 2, 512>}, {transform_indices = @transform_1, window_bounds = array<i64: 512, 8>}, {pipeline_mode = #tpu.pipeline_mode<synchronous>, transform_indices = @transform_2, window_bounds = array<i64: 32, 18>}, {pipeline_mode = #tpu.pipeline_mode<synchronous>, transform_indices = @transform_3, window_bounds = array<i64: 32, 8>}, {pipeline_mode = #tpu.pipeline_mode<synchronous>, transform_indices = @transform_4, window_bounds = array<i64: 32, 1>}, {pipeline_mode = #tpu.pipeline_mode<synchronous>, transform_indices = @transform_5, window_bounds = array<i64: 16, 32>}, {pipeline_mode = #tpu.pipeline_mode<synchronous>, transform_indices = @transform_6, window_bounds = array<i64: 16, 1>}, {pipeline_mode = #tpu.pipeline_mode<synchronous>, transform_indices = @transform_7, window_bounds = array<i64: 4, 16>}, {pipeline_mode = #tpu.pipeline_mode<synchronous>, transform_indices = @transform_8, window_bounds = array<i64: 4, 1>}, {transform_indices = @transform_9, window_bounds = array<i64: 4, 512>}]} {
    %c0 = arith.constant 0 : index
    %c0_0 = arith.constant 0 : index
    %0 = vector.load %arg1[%c0, %c0_0] : memref<2x512xi32, #tpu.memory_space<vmem>>, vector<2x512xi32>
    %1 = tpu.iota {dimensions = array<i32: 0>} : vector<18x512xi32>
    %2 = vector.extract_strided_slice %0 {offsets = [0, 0], sizes = [1, 512], strides = [1, 1]} : vector<2x512xi32> to vector<1x512xi32>
    %c0_i32 = arith.constant 0 : i32
    %3 = vector.broadcast %c0_i32 : i32 to vector<1x512xi32>
    %4 = arith.addi %2, %3 : vector<1x512xi32>
    %5 = vector.broadcast %4 : vector<1x512xi32> to vector<18x512xi32>
    %6 = arith.cmpi eq, %1, %5 : vector<18x512xi32>
    %7 = vector.extract_strided_slice %0 {offsets = [1, 0], sizes = [1, 512], strides = [1, 1]} : vector<2x512xi32> to vector<1x512xi32>
    %c10_i32 = arith.constant 10 : i32
    %8 = vector.broadcast %c10_i32 : i32 to vector<1x512xi32>
    %9 = arith.addi %7, %8 : vector<1x512xi32>
    %10 = vector.broadcast %9 : vector<1x512xi32> to vector<18x512xi32>
    %11 = arith.cmpi eq, %1, %10 : vector<18x512xi32>
    %12 = arith.ori %6, %11 : vector<18x512xi1>
    %13 = arith.extui %12 : vector<18x512xi1> to vector<18x512xi32>
    %14 = arith.sitofp %13 : vector<18x512xi32> to vector<18x512xf32>
    %c0_1 = arith.constant 0 : index
    %c0_2 = arith.constant 0 : index
    %15 = vector.load %arg2[%c0_1, %c0_2] : memref<512x8xf32, #tpu.memory_space<vmem>>, vector<512x8xf32>
    %c0_3 = arith.constant 0 : index
    %c0_4 = arith.constant 0 : index
    %16 = vector.load %arg3[%c0_3, %c0_4] : memref<32x18xf32, #tpu.memory_space<vmem>>, vector<32x18xf32>
    %cst = arith.constant dense<0.000000e+00> : vector<32x512xf32>
    %17 = tpu.matmul %16, %14, %cst {dimension_numbers = #tpu.dot_dimension_numbers<[1], [0], [0], [1], [0, 0, 1, 1], [], []>} : vector<32x18xf32>, vector<18x512xf32>, vector<32x512xf32> -> vector<32x512xf32>
    %c0_5 = arith.constant 0 : index
    %c0_6 = arith.constant 0 : index
    %18 = vector.load %arg4[%c0_5, %c0_6] : memref<32x8xf32, #tpu.memory_space<vmem>>, vector<32x8xf32>
    %cst_7 = arith.constant dense<0.000000e+00> : vector<32x512xf32>
    %19 = tpu.matmul %18, %15, %cst_7 {dimension_numbers = #tpu.dot_dimension_numbers<[1], [1], [0], [0], [0, 0, 1, 0], [], []>} : vector<32x8xf32>, vector<512x8xf32>, vector<32x512xf32> -> vector<32x512xf32>
    %20 = arith.addf %17, %19 : vector<32x512xf32>
    %c0_8 = arith.constant 0 : index
    %c0_9 = arith.constant 0 : index
    %21 = vector.load %arg5[%c0_8, %c0_9] : memref<32x1xf32, #tpu.memory_space<vmem>>, vector<32x1xf32>
    %22 = vector.broadcast %21 : vector<32x1xf32> to vector<32x512xf32>
    %23 = arith.addf %20, %22 : vector<32x512xf32>
    %cst_10 = arith.constant 0.000000e+00 : f32
    %24 = vector.broadcast %cst_10 : f32 to vector<32x512xf32>
    %25 = arith.maximumf %23, %24 : vector<32x512xf32>
    %c0_11 = arith.constant 0 : index
    %c0_12 = arith.constant 0 : index
    %26 = vector.load %arg6[%c0_11, %c0_12] : memref<16x32xf32, #tpu.memory_space<vmem>>, vector<16x32xf32>
    %cst_13 = arith.constant dense<0.000000e+00> : vector<16x512xf32>
    %27 = tpu.matmul %26, %25, %cst_13 {dimension_numbers = #tpu.dot_dimension_numbers<[1], [0], [0], [1], [0, 0, 1, 1], [], []>} : vector<16x32xf32>, vector<32x512xf32>, vector<16x512xf32> -> vector<16x512xf32>
    %c0_14 = arith.constant 0 : index
    %c0_15 = arith.constant 0 : index
    %28 = vector.load %arg7[%c0_14, %c0_15] : memref<16x1xf32, #tpu.memory_space<vmem>>, vector<16x1xf32>
    %29 = vector.broadcast %28 : vector<16x1xf32> to vector<16x512xf32>
    %30 = arith.addf %27, %29 : vector<16x512xf32>
    %cst_16 = arith.constant 0.000000e+00 : f32
    %31 = vector.broadcast %cst_16 : f32 to vector<16x512xf32>
    %32 = arith.maximumf %30, %31 : vector<16x512xf32>
    %c0_17 = arith.constant 0 : index
    %c0_18 = arith.constant 0 : index
    %33 = vector.load %arg8[%c0_17, %c0_18] : memref<4x16xf32, #tpu.memory_space<vmem>>, vector<4x16xf32>
    %cst_19 = arith.constant dense<0.000000e+00> : vector<4x512xf32>
    %34 = tpu.matmul %33, %32, %cst_19 {dimension_numbers = #tpu.dot_dimension_numbers<[1], [0], [0], [1], [0, 0, 1, 1], [], []>} : vector<4x16xf32>, vector<16x512xf32>, vector<4x512xf32> -> vector<4x512xf32>
    %c0_20 = arith.constant 0 : index
    %c0_21 = arith.constant 0 : index
    %35 = vector.load %arg9[%c0_20, %c0_21] : memref<4x1xf32, #tpu.memory_space<vmem>>, vector<4x1xf32>
    %36 = vector.broadcast %35 : vector<4x1xf32> to vector<4x512xf32>
    %37 = arith.addf %34, %36 : vector<4x512xf32>
    %c0_22 = arith.constant 0 : index
    %c0_23 = arith.constant 0 : index
    %38 = vector.load %arg10[%c0_22, %c0_23] : memref<4x512xf32, #tpu.memory_space<vmem>>, vector<4x512xf32>
    tpu.vector_store %arg10[%c0_22, %c0_23], %37 {strides = array<i32>} : memref<4x512xf32, #tpu.memory_space<vmem>>, vector<4x512xf32>,
    return
  }
  func.func @transform_0(%arg0: i32) -> (i32, i32) {
    %c0_i32 = arith.constant 0 : i32
    %c0_i32_0 = arith.constant 0 : i32
    return %c0_i32, %arg0 : i32, i32
  }
  func.func @transform_1(%arg0: i32) -> (i32, i32) {
    %c0_i32 = arith.constant 0 : i32
    %c0_i32_0 = arith.constant 0 : i32
    return %arg0, %c0_i32 : i32, i32
  }
  func.func @transform_2(%arg0: i32) -> (i32, i32) {
    %c0_i32 = arith.constant 0 : i32
    %c0_i32_0 = arith.constant 0 : i32
    %c0_i32_1 = arith.constant 0 : i32
    return %c0_i32, %c0_i32_0 : i32, i32
  }
  func.func @transform_3(%arg0: i32) -> (i32, i32) {
    %c0_i32 = arith.constant 0 : i32
    %c0_i32_0 = arith.constant 0 : i32
    %c0_i32_1 = arith.constant 0 : i32
    return %c0_i32, %c0_i32_0 : i32, i32
  }
  func.func @transform_4(%arg0: i32) -> (i32, i32) {
    %c0_i32 = arith.constant 0 : i32
    %c0_i32_0 = arith.constant 0 : i32
    %c0_i32_1 = arith.constant 0 : i32
    return %c0_i32, %c0_i32_0 : i32, i32
  }
  func.func @transform_5(%arg0: i32) -> (i32, i32) {
    %c0_i32 = arith.constant 0 : i32
    %c0_i32_0 = arith.constant 0 : i32
    %c0_i32_1 = arith.constant 0 : i32
    return %c0_i32, %c0_i32_0 : i32, i32
  }
  func.func @transform_6(%arg0: i32) -> (i32, i32) {
    %c0_i32 = arith.constant 0 : i32
    %c0_i32_0 = arith.constant 0 : i32
    %c0_i32_1 = arith.constant 0 : i32
    return %c0_i32, %c0_i32_0 : i32, i32
  }
  func.func @transform_7(%arg0: i32) -> (i32, i32) {
    %c0_i32 = arith.constant 0 : i32
    %c0_i32_0 = arith.constant 0 : i32
    %c0_i32_1 = arith.constant 0 : i32
    return %c0_i32, %c0_i32_0 : i32, i32
  }
  func.func @transform_8(%arg0: i32) -> (i32, i32) {
    %c0_i32 = arith.constant 0 : i32
    %c0_i32_0 = arith.constant 0 : i32
    %c0_i32_1 = arith.constant 0 : i32
    return %c0_i32, %c0_i32_0 : i32, i32
  }
  func.func @transform_9(%arg0: i32) -> (i32, i32) {
    %c0_i32 = arith.constant 0 : i32
    %c0_i32_0 = arith.constant 0 : i32
    return %c0_i32, %arg0 : i32, i32
  }
}

</mosaic_0001>

<bundles_post_ra>
// kernel: tpu_custom_call.1
= control target key start
LH: loop header
LB: loop body
LE: loop exit
PB: predicated region body
PF: predicated region fallthrough
CT: control target
= control target key end

     0   :  { %14 = vsyncpa [#allocation3], 0  ;;  %s2414_s0 = inlined_call_operand.vmem [shape: s32[2,1024], index: 0, kind: input, shape index: {}]   ;;  %s2415_s1 = inlined_call_operand.vmem [shape: f32[1024,8], index: 1, kind: input, shape index: {}]   ;;  %s2416_s2 = inlined_call_operand.vmem [shape: f32[32,18], index: 2, kind: input, shape index: {}]   ;;  %s2417_s3 = inlined_call_operand.vmem [shape: f32[32,8], index: 3, kind: input, shape index: {}]   ;;  %s2418_s4 = inlined_call_operand.vmem [shape: f32[32,1], index: 4, kind: input, shape index: {}]   ;;  %s2419_s5 = inlined_call_operand.vmem [shape: f32[16,32], index: 5, kind: input, shape index: {}]   ;;  %s2420_s6 = inlined_call_operand.vmem [shape: f32[16,1], index: 6, kind: input, shape index: {}]   ;;  %s2421_s7 = inlined_call_operand.vmem [shape: f32[4,16], index: 7, kind: input, shape index: {}]   ;;  %s2422_s8 = inlined_call_operand.vmem [shape: f32[4,1], index: 8, kind: input, shape index: {}]   ;;  %s2423_s9 = inlined_call_operand.hbm [shape: f32[4,1024], index: 9, kind: output, shape index: {}]  }
   0x1   :  { %16 = vsyncpa [#allocation3 + $0x1], 0  ;;  %s1998_s30 = smov 0   ;;  %s2000_s10 = smov 0  }
   0x2   :  { %s2002_s11 = smov 0   ;;  %s2004_s12 = smov 0  }
   0x3 LB: > { %s2019_s13 = sadd.s32 4294967295, %s1942_s12   ;;  %s1633_s14 = sadd.s32 4294967294, %s1942_s12   ;;  %s1942_s12 = sphi %s2004_s12, %s2435_s12   ;;  %s1938_s11 = sphi %s2002_s11, %s2434_s11   ;;  %s1934_s10 = sphi %s2000_s10, %s2433_s10   ;;  %s1930_s30 = sphi %s1998_s30, %s2432_s30  }
   0x4   : > { %s2023_s15 = sadd.s32 1, %s1942_s12   ;;  %s228_s16 = sadd.s32 1, %s1938_s11 }
   0x5   : > { %s225_s17 = ssub.s32 %s1942_s12, %s2023_s15  ;;  %p238_p0 = scmp.ne.s32.totalorder %s1938_s11, %s1934_s10 }
   0x6   : > { %p226_p1 = scmp.eq.s32.totalorder %s225_s17, 0  ;;  %p239_p2 = scmp.eq.s32.totalorder %s2019_s13, 1 }
   0x7   : > { %p244_p3 = scmp.ne.s32.totalorder %s1934_s10, %s1930_s30  ;;  %p245_p4 = scmp.eq.s32.totalorder %s1633_s14, 1 }
   0x8   : > { %s2034_s18 = scalar_select %p226_p1, %s1938_s11, %s228_s16  }
   0x9   : > { %p2036_p5 = por %p239_p2, %p238_p0  ;;  %p2040_p6 = por %p245_p4, %p244_p3 }
   0xa   : > { %p1636_p7 = scmp.ge.s32.totalorder %s1942_s12, 1  ;;  %p302_p8 = scmp.lt.s32.totalorder %s1942_s12, 3 }
   0xc   : > { %p303_p9 = pnand %p1636_p7, %p302_p8 }
   0xd   : > { %s1640_s21 = sshll.u32 (!%p303_p9), %s2019_s13, 6  ;;  %s1757_s23 = sshll.u32 (!%p303_p9), %s2019_s13, 8 }
   0xe   : > { %306 = sbr.rel (%p303_p9) target bundleno = 745 (0x2e9), region = 56  ;;  %p350_p10 = scmp.lt.s32.totalorder (!%p303_p9), %s1640_s21, 127 }
   0xf   : > { %s2379_s26 = scalar_lea.hbm (!%p303_p9), %s2423_s9, %s1757_s23 }
  0x13   : > { %vm558_vm0 = vcmask 64512   ;;  %v2050_v0 = vld [vmem:[%s2417_s3] sm:$0xff]  ;;  %s2437_s21 = smov (!%p350_p10, %s1640_s21), 127  ;;  %v1944_v1 = vmov 0   ;;  %v1146_v2 = vld [vmem:[%s2418_s4 + $0x8] sm:$0xff]  ;;  %v1148_v3 = vld [vmem:[%s2418_s4 + $0x18] sm:$0xff]  ;;  %v357_v47 = vlaneseq }
  0x14   : > { %1790 = vmatprep.mubr.msk.f32.mxu0 %vm558_vm0, %v2050_v0  ;;  %1830 = vmatprep.mubr.msk.f32.mxu1 %vm558_vm0, %v2050_v0  ;;  %s1641_s28 = sshll.u32 %s2437_s21, 3  ;;  %v1145_v4 = vld [vmem:[%s2418_s4] sm:$0xff]  ;;  %v1147_v5 = vld [vmem:[%s2418_s4 + $0x10] sm:$0xff]  ;;  %v1204_v16 = vld [vmem:[%s2420_s6 + $0x8] sm:$0xff]  ;;  %vm954_vm11 = vcmask 1041408  }
  0x15   : > { %1881 = vset.pattern.permute.xlu1 %v1944_v1  ;;  %1880 = vset.pattern.permute.xlu0 %v1944_v1  ;;  %s2065_s16 = scalar_lea.vmem %s2415_s1, %s1641_s28  ;;  %v1385_v21 = vld [vmem:[%s2422_s8] sm:$0xf]  ;;  %s1638_s28 = sshll.u32 %s2019_s13, 2  ;;  %v2166_v52 = vshrl.u32 %v357_v47, 7 }
  0x16   : > { %1156 = vperm.xlu1 %1881, %v1146_v2   ;;  %1166 = vperm.xlu0 %1880, %v1148_v3   ;;  %v517_v6 = vld [vmem:[%s2065_s16 + $0xf8] sm:$0xff]  ;;  %v516_v10 = vld [vmem:[%s2065_s16 + $0xf0] sm:$0xff]  ;;  %v515_v14 = vld [vmem:[%s2065_s16 + $0xe8] sm:$0xff]  ;;  %p344_p11 = scmp.lt.s32.totalorder %s1638_s28, 7  ;;  %s1947_s13 = smov [#allocation2]  }
  0x17   : > { %v549_v7 = vld [vmem:[%s2065_s16 + $0x1f8] sm:$0xff]  ;;  %1758 = vmatprep.subr.msk.mxu0 %vm558_vm0, %v517_v6  ;;  %v548_v11 = vld [vmem:[%s2065_s16 + $0x1f0] sm:$0xff]  ;;  %v547_v15 = vld [vmem:[%s2065_s16 + $0x1e8] sm:$0xff]  ;;  %v367_v58 = vsub.s32 2, %v2166_v52  ;;  %v412_v60 = vsub.s32 3, %v2166_v52  ;;  %v375_v61 = vsub.s32 6, %v2166_v52 }
  0x18   : > { %v501_v8 = vld [vmem:[%s2065_s16 + $0x78] sm:$0xff]  ;;  %1798 = vmatprep.subr.msk.mxu1 %vm558_vm0, %v549_v7  ;;  %v500_v12 = vld [vmem:[%s2065_s16 + $0x70] sm:$0xff]  ;;  %v499_v17 = vld [vmem:[%s2065_s16 + $0x68] sm:$0xff]  ;;  %s2439_s28 = smov (!%p344_p11, %s1638_s28), 7  ;;  %v420_v62 = vsub.s32 7, %v2166_v52  ;;  %v408_v6 = vsub.s32 1, %v2166_v52 }
  0x19   : > { %v533_v9 = vld [vmem:[%s2065_s16 + $0x178] sm:$0xff]  ;;  %1759 = vmatpush3.xpose.msk.msra.mxu0 %vm558_vm0, %v501_v8  ;;  %v532_v13 = vld [vmem:[%s2065_s16 + $0x170] sm:$0xff]  ;;  %v531_v18 = vld [vmem:[%s2065_s16 + $0x168] sm:$0xff]  ;;  %s1639_s17 = sshll.u32 %s2439_s28, 1  ;;  %v371_v8 = vsub.s32 4, %v2166_v52  ;;  %s1886_s29 = sshll.u32 %s1947_s13, 4  ;;  %s1887_s29 = int_to_ptr.vmem [resolvable:$false] %s1886_s29 }
  0x1a   : > { %1799 = vmatpush3.xpose.msk.msra.mxu1 %vm558_vm0, %v533_v9  ;;  %1760 = vmatprep.subr.msk.mxu0 %vm558_vm0, %v516_v10  ;;  %v514_v19 = vld [vmem:[%s2065_s16 + $0xe0] sm:$0xff]  ;;  %v513_v24 = vld [vmem:[%s2065_s16 + $0xd8] sm:$0xff]  ;;  %v512_v28 = vld [vmem:[%s2065_s16 + $0xd0] sm:$0xff]  ;;  %s347_s21 = scalar_lea.vmem %s2414_s0, %s1639_s17  ;;  %s340_s17 = sand.u32 1, %s1934_s10  }
  0x1b   : > { %1800 = vmatprep.subr.msk.mxu1 %vm558_vm0, %v548_v11  ;;  %1151 = vperm.xlu1 %1881, %v1145_v4   ;;  %v546_v20 = vld [vmem:[%s2065_s16 + $0x1e0] sm:$0xff]  ;;  %v545_v25 = vld [vmem:[%s2065_s16 + $0x1d8] sm:$0xff]  ;;  %v544_v29 = vld [vmem:[%s2065_s16 + $0x1d0] sm:$0xff]  ;;  %v363_v4 = vsub.s32 0, %v2166_v52  ;;  %v416_v11 = vsub.s32 5, %v2166_v52  ;;  %s1637_s22 = sshll.u32 %s340_s17, 4 }
  0x1c   : > { %1161 = vperm.xlu0 %1880, %v1147_v5   ;;  %v498_v22 = vld [vmem:[%s2065_s16 + $0x60] sm:$0xff]  ;;  %v497_v26 = vld [vmem:[%s2065_s16 + $0x58] sm:$0xff]  ;;  %v496_v30 = vld [vmem:[%s2065_s16 + $0x50] sm:$0xff]  ;;  %s1548_s27 = scalar_lea.sflag [#allocation3], %s340_s17  ;;  %s1888_s14 = scalar_lea.vmem %s1887_s29, 512 }
  0x1d   : > { %1761 = vmatpush3.xpose.msk.msra.mxu0 %vm558_vm0, %v500_v12  ;;  %v530_v23 = vld [vmem:[%s2065_s16 + $0x160] sm:$0xff]  ;;  %v529_v27 = vld [vmem:[%s2065_s16 + $0x158] sm:$0xff]  ;;  %v528_v31 = vld [vmem:[%s2065_s16 + $0x150] sm:$0xff] }
  0x1e   : > { %1801 = vmatpush3.xpose.msk.msra.mxu1 %vm558_vm0, %v532_v13  ;;  %1762 = vmatprep.subr.msk.mxu0 %vm558_vm0, %v515_v14  ;;  %v511_v32 = vld [vmem:[%s2065_s16 + $0xc8] sm:$0xff]  ;;  %v1203_v34 = vld [vmem:[%s2420_s6] sm:$0xff]  ;;  %v509_v41 = vld [vmem:[%s2065_s16 + $0xb8] sm:$0xff] }
  0x1f   : > { %1802 = vmatprep.subr.msk.mxu1 %vm558_vm0, %v547_v15  ;;  %v543_v33 = vld [vmem:[%s2065_s16 + $0x1c8] sm:$0xff]  ;;  %v510_v37 = vld [vmem:[%s2065_s16 + $0xc0] sm:$0xff]  ;;  %1207 = vperm.xlu1 %1881, %v1203_v34   ;;  %v541_v42 = vld [vmem:[%s2065_s16 + $0x1b8] sm:$0xff] }
  0x20   : > { %1212 = vperm.xlu0 %1880, %v1204_v16   ;;  %v495_v35 = vld [vmem:[%s2065_s16 + $0x48] sm:$0xff]  ;;  %v542_v38 = vld [vmem:[%s2065_s16 + $0x1c0] sm:$0xff]  ;;  %v493_v43 = vld [vmem:[%s2065_s16 + $0x38] sm:$0xff]  ;;  %v360_v16 = vadd.s32 16, %v2166_v52 }
  0x21   : > { %1763 = vmatpush3.xpose.msk.msra.mxu0 %vm558_vm0, %v499_v17  ;;  %v527_v36 = vld [vmem:[%s2065_s16 + $0x148] sm:$0xff]  ;;  %v494_v39 = vld [vmem:[%s2065_s16 + $0x40] sm:$0xff]  ;;  %v525_v44 = vld [vmem:[%s2065_s16 + $0x138] sm:$0xff] }
  0x22   : > { %1803 = vmatpush3.xpose.msk.msra.mxu1 %vm558_vm0, %v531_v18  ;;  %1764 = vmatprep.subr.msk.mxu0 %vm558_vm0, %v514_v19  ;;  %v526_v40 = vld [vmem:[%s2065_s16 + $0x140] sm:$0xff]  ;;  %v508_v45 = vld [vmem:[%s2065_s16 + $0xb0] sm:$0xff]  ;;  %v507_v50 = vld [vmem:[%s2065_s16 + $0xa8] sm:$0xff] }
  0x23   : > { %1804 = vmatprep.subr.msk.mxu1 %vm558_vm0, %v546_v20  ;;  %v540_v46 = vld [vmem:[%s2065_s16 + $0x1b0] sm:$0xff]  ;;  %v539_v51 = vld [vmem:[%s2065_s16 + $0x1a8] sm:$0xff]  ;;  %v356_v53 = vld [vmem:[%s347_s21] sm:$0xff]  ;;  %s342_s21 = scalar_lea.vmem [#allocation2], %s1637_s22 }
  0x24   : > { %1388 = vperm.xlu0 %1880, %v1385_v21   ;;  %v492_v48 = vld [vmem:[%s2065_s16 + $0x30] sm:$0xff]  ;;  %v491_v54 = vld [vmem:[%s2065_s16 + $0x28] sm:$0xff]  ;;  %v506_v56 = vld [vmem:[%s2065_s16 + $0xa0] sm:$0xff]  ;;  %v405_v59 = vadd.s32 10, %v356_v53  ;;  %v368_v5 = vrot.slane %v356_v53, %v367_v58  ;;  %v376_v9 = vrot.slane %v356_v53, %v375_v61  ;;  %v364_v17 = vrot.slane %v356_v53, %v363_v4 }
  0x25   : > { %1765 = vmatpush3.xpose.msk.msra.mxu0 %vm558_vm0, %v498_v22  ;;  %v524_v49 = vld [vmem:[%s2065_s16 + $0x130] sm:$0xff]  ;;  %v523_v55 = vld [vmem:[%s2065_s16 + $0x128] sm:$0xff]  ;;  %v538_v57 = vld [vmem:[%s2065_s16 + $0x1a0] sm:$0xff]  ;;  %v372_v21 = vrot.slane %v356_v53, %v371_v8 }
  0x26   : > { %1805 = vmatpush3.xpose.msk.msra.mxu1 %vm558_vm0, %v530_v23  ;;  %1766 = vmatprep.subr.msk.mxu0 %vm558_vm0, %v513_v24  ;;  %v490_v63 = vld [vmem:[%s2065_s16 + $0x20] sm:$0xff]  ;;  %v505_v2 = vld [vmem:[%s2065_s16 + $0x98] sm:$0xff]  ;;  %v413_v7 = vrot.slane %v405_v59, %v412_v60  ;;  %v421_v10 = vrot.slane %v405_v59, %v420_v62  ;;  %v504_v14 = vld [vmem:[%s2065_s16 + $0x90] sm:$0xff]  ;;  %v2201_v18 = vrot.slane %v368_v5, %v363_v4 }
  0x27   : > { %1806 = vmatprep.subr.msk.mxu1 %vm558_vm0, %v545_v25  ;;  %v522_v1 = vld [vmem:[%s2065_s16 + $0x120] sm:$0xff]  ;;  %v537_v3 = vld [vmem:[%s2065_s16 + $0x198] sm:$0xff]  ;;  %v536_v15 = vld [vmem:[%s2065_s16 + $0x190] sm:$0xff]  ;;  %v409_v20 = vrot.slane %v405_v59, %v408_v6  ;;  %v2207_v22 = vrot.slane %v376_v9, %v363_v4  ;;  %v417_v24 = vrot.slane %v405_v59, %v416_v11 }
  0x28   : > { %v489_v12 = vld [vmem:[%s2065_s16 + $0x18] sm:$0xff]  ;;  %v2203_v19 = vrot.slane %v413_v7, %v408_v6  ;;  %v2209_v23 = vrot.slane %v421_v10, %v408_v6  ;;  %v488_v25 = vld [vmem:[%s2065_s16 + $0x10] sm:$0xff]  ;;  %vm402_vm1 = vcmp.eq.s32.totalorder %v360_v16, %v2201_v18  ;;  %v519_v34 = vld [vmem:[%s2065_s16 + $0x108] sm:$0xff] }
  0x29   : > { %1767 = vmatpush3.xpose.msk.msra.mxu0 %vm558_vm0, %v497_v26  ;;  %v521_v13 = vld [vmem:[%s2065_s16 + $0x118] sm:$0xff]  ;;  %v520_v26 = vld [vmem:[%s2065_s16 + $0x110] sm:$0xff]  ;;  %vm404_vm3 = vcmp.eq.s32.totalorder %v360_v16, %v2207_v22 }
  0x2a   : > { %1807 = vmatpush3.xpose.msk.msra.mxu1 %vm558_vm0, %v529_v27  ;;  %1768 = vmatprep.subr.msk.mxu0 %vm558_vm0, %v512_v28  ;;  %v503_v27 = vld [vmem:[%s2065_s16 + $0x88] sm:$0xff]  ;;  %vm447_vm2 = vcmp.eq.s32.totalorder %v360_v16, %v2203_v19  ;;  %vm449_vm4 = vcmp.eq.s32.totalorder %v360_v16, %v2209_v23  ;;  %v552_v53 = vld [vmem:[%s2416_s2 + $0x10] sm:$0xff] }
  0x2b   : > { %1808 = vmatprep.subr.msk.mxu1 %vm558_vm0, %v544_v29  ;;  %v535_v28 = vld [vmem:[%s2065_s16 + $0x188] sm:$0xff]  ;;  %v2217_v29 = vrot.slane %v364_v17, %v363_v4  ;;  %vm459_vm5 = vmor %vm402_vm1, %vm447_vm2 }
  0x2c   : > { %vm461_vm6 = vmor %vm404_vm3, %vm449_vm4 }
  0x2d   : > { %1769 = vmatpush3.xpose.msk.msra.mxu0 %vm558_vm0, %v496_v30  ;;  %v2221_v30 = vrot.slane %v409_v20, %v408_v6  ;;  %vm401_vm7 = vcmp.eq.s32.totalorder %v360_v16, %v2217_v29 }
  0x2e   : > { %1809 = vmatpush3.xpose.msk.msra.mxu1 %vm558_vm0, %v528_v31  ;;  %1770 = vmatprep.subr.msk.mxu0 %vm558_vm0, %v511_v32  ;;  %v2223_v31 = vrot.slane %v372_v21, %v363_v4  ;;  %v2229_v32 = vrot.slane %v417_v24, %v408_v6 }
  0x2f   : > { %1810 = vmatprep.subr.msk.mxu1 %vm558_vm0, %v543_v33  ;;  %v487_v33 = vld [vmem:[%s2065_s16 + $0x8] sm:$0xff]  ;;  %vm446_vm8 = vcmp.eq.s32.totalorder %v360_v16, %v2221_v30 }
  0x30   : > { %vm403_vm9 = vcmp.eq.s32.totalorder %v360_v16, %v2223_v31  ;;  %vm448_vm10 = vcmp.eq.s32.totalorder %v360_v16, %v2229_v32  ;;  %vm458_vm12 = vmor %vm401_vm7, %vm446_vm8 }
  0x31   : > { %1771 = vmatpush3.xpose.msk.msra.mxu0 %vm558_vm0, %v495_v35  ;;  %v502_v35 = vld [vmem:[%s2065_s16 + $0x80] sm:$0xff]  ;;  %vm460_vm13 = vmor %vm403_vm9, %vm448_vm10  ;;  %vm394_vm9 = vcmp.eq.s32.totalorder %v2166_v52, %v2201_v18  ;;  %vm439_vm10 = vcmp.eq.s32.totalorder %v2166_v52, %v2203_v19 }
  0x32   : > { %1811 = vmatpush3.xpose.msk.msra.mxu1 %vm558_vm0, %v527_v36  ;;  %1772 = vmatprep.subr.msk.mxu0 %vm558_vm0, %v510_v37  ;;  %v534_v36 = vld [vmem:[%s2065_s16 + $0x180] sm:$0xff]  ;;  %v359_v37 = vadd.s32 8, %v2166_v52 }
  0x33   : > { %1812 = vmatprep.subr.msk.mxu1 %vm558_vm0, %v542_v38  ;;  %v486_v38 = vld [vmem:[%s2065_s16] sm:$0xff] }
  0x34   : > { %vm398_vm14 = vcmp.eq.s32.totalorder %v359_v37, %v2201_v18  ;;  %vm443_vm15 = vcmp.eq.s32.totalorder %v359_v37, %v2203_v19  ;;  %vm400_vm1 = vcmp.eq.s32.totalorder %v359_v37, %v2207_v22  ;;  %vm445_vm2 = vcmp.eq.s32.totalorder %v359_v37, %v2209_v23 }
  0x35   : > { %1773 = vmatpush3.xpose.msk.msra.mxu0 %vm558_vm0, %v494_v39  ;;  %v518_v39 = vld [vmem:[%s2065_s16 + $0x100] sm:$0xff]  ;;  %vm397_vm3 = vcmp.eq.s32.totalorder %v359_v37, %v2217_v29  ;;  %vm442_vm4 = vcmp.eq.s32.totalorder %v359_v37, %v2221_v30  ;;  %vm444_vm7 = vcmp.eq.s32.totalorder %v359_v37, %v2229_v32  ;;  %vm457_vm8 = vmor %vm400_vm1, %vm445_vm2  ;;  %vm393_vm2 = vcmp.eq.s32.totalorder %v2166_v52, %v2217_v29  ;;  %s1562_s16 = sshll.u32 %s342_s21, 4  ;;  %s1563_s16 = int_to_ptr.vmem [resolvable:$true] %s1562_s16 }
  0x36   : > { %1813 = vmatpush3.xpose.msk.msra.mxu1 %vm558_vm0, %v526_v40  ;;  %1774 = vmatprep.subr.msk.mxu0 %vm558_vm0, %v509_v41  ;;  %v1945_v40 = vmov 0.0   ;;  %vm451_vm1 = vmor %vm394_vm9, %vm439_vm10  ;;  %vm1391_vm9 = vcmask 130048   ;;  %s1882_s28 = scalar_lea.vmem %s1563_s16, 256  ;;  %p1889_p1 = scmp.lt.s32.totalorder %s1563_s16, %s1887_s29 }
  0x37   : > { %1814 = vmatprep.subr.msk.mxu1 %vm558_vm0, %v541_v42  ;;  %v1651_v41 = vsel %vm459_vm5, 1.0, %v1945_v40  ;;  %v1653_v42 = vsel %vm461_vm6, 1.0, %v1945_v40  ;;  %vm2269_vm5 = vmor %vm398_vm14, %vm443_vm15  ;;  %vm399_vm6 = vcmp.eq.s32.totalorder %v359_v37, %v2223_v31  ;;  %vm441_vm14 = vcmp.eq.s32.totalorder %v2166_v52, %v2209_v23  ;;  %p1883_p12 = scmp.ne.s32.totalorder %s1563_s16, %s1882_s28  ;;  %p1890_p2 = scmp.lt.s32.totalorder %s1888_s14, %s1882_s28 }
  0x38   : > { %vm2300_vm15 = vmor %vm399_vm6, %vm444_vm7  ;;  %vm440_vm6 = vcmp.eq.s32.totalorder %v2166_v52, %v2229_v32 }
  0x39   : > { %1775 = vmatpush3.xpose.msk.msra.mxu0 %vm558_vm0, %v493_v43  ;;  %v555_v43 = vld [vmem:[%s2417_s3 + $0x8] sm:$0xff]  ;;  %p1884_p13 = pnand %p1883_p12, %p2036_p5  ;;  %p1891_p3 = por %p1890_p2, %p1889_p1 }
  0x3a   : > { %1815 = vmatpush3.xpose.msk.msra.mxu1 %vm558_vm0, %v525_v44  ;;  %1776 = vmatprep.subr.msk.mxu0 %vm558_vm0, %v508_v45  ;;  %v1650_v44 = vsel %vm458_vm12, 1.0, %v1945_v40  ;;  %v1652_v45 = vsel %vm460_vm13, 1.0, %v1945_v40  ;;  %vm2285_vm12 = vmor %vm397_vm3, %vm442_vm4  ;;  %vm396_vm13 = vcmp.eq.s32.totalorder %v2166_v52, %v2207_v22  ;;  %vm438_vm3 = vcmp.eq.s32.totalorder %v2166_v52, %v2221_v30 }
  0x3b   : > { %1816 = vmatprep.subr.msk.mxu1 %vm558_vm0, %v540_v46  ;;  %vm395_vm4 = vcmp.eq.s32.totalorder %v2166_v52, %v2223_v31  ;;  %v551_v52 = vld [vmem:[%s2416_s2 + $0x8] sm:$0xff]  ;;  %p1885_p0 = pneg %p1884_p13 }
  0x3c   : > { %vm452_vm7 = vmor %vm395_vm4, %vm440_vm6 }
  0x3d   : > { %1777 = vmatpush3.xpose.msk.msra.mxu0 %vm558_vm0, %v492_v48  ;;  %p1892_p4 = pnand %p1891_p3, %p1885_p0 }
  0x3e   : > { %1817 = vmatpush3.xpose.msk.msra.mxu1 %vm558_vm0, %v524_v49  ;;  %1778 = vmatprep.subr.msk.mxu0 %vm558_vm0, %v507_v50  ;;  %v1946_v49 = vmov 1.0   ;;  %v557_v50 = vld [vmem:[%s2417_s3 + $0x18] sm:$0xff] }
  0x3f   : > { %1818 = vmatprep.subr.msk.mxu1 %vm558_vm0, %v539_v51  ;;  %v550_v51 = vld [vmem:[%s2416_s2] sm:$0xff] }
  0x41   : > { %1779 = vmatpush3.xpose.msk.msra.mxu0 %vm558_vm0, %v491_v54  ;;  %v553_v54 = vld [vmem:[%s2416_s2 + $0x18] sm:$0xff] }
  0x42   : > { %1819 = vmatpush3.xpose.msk.msra.mxu1 %vm558_vm0, %v523_v55  ;;  %1780 = vmatprep.subr.msk.mxu0 %vm558_vm0, %v506_v56 }
  0x43   : > { %1820 = vmatprep.subr.msk.mxu1 %vm558_vm0, %v538_v57 }
  0x45   : > { %1781 = vmatpush3.xpose.msk.msra.mxu0 %vm558_vm0, %v490_v63 }
  0x46   : > { %1821 = vmatpush3.xpose.msk.msra.mxu1 %vm558_vm0, %v522_v1  ;;  %1782 = vmatprep.subr.msk.mxu0 %vm558_vm0, %v505_v2 }
  0x47   : > { %1822 = vmatprep.subr.msk.mxu1 %vm558_vm0, %v537_v3 }
  0x49   : > { %1783 = vmatpush3.xpose.msk.msra.mxu0 %vm558_vm0, %v489_v12 }
  0x4a   : > { %1823 = vmatpush3.xpose.msk.msra.mxu1 %vm558_vm0, %v521_v13  ;;  %1784 = vmatprep.subr.msk.mxu0 %vm558_vm0, %v504_v14 }
  0x4b   : > { %1824 = vmatprep.subr.msk.mxu1 %vm558_vm0, %v536_v15 }
  0x4d   : > { %1785 = vmatpush3.xpose.msk.msra.mxu0 %vm558_vm0, %v488_v25 }
  0x4e   : > { %1825 = vmatpush3.xpose.msk.msra.mxu1 %vm558_vm0, %v520_v26  ;;  %1786 = vmatprep.subr.msk.mxu0 %vm558_vm0, %v503_v27 }
  0x4f   : > { %1826 = vmatprep.subr.msk.mxu1 %vm558_vm0, %v535_v28 }
  0x51   : > { %1787 = vmatpush3.xpose.msk.msra.mxu0 %vm558_vm0, %v487_v33 }
  0x52   : > { %1827 = vmatpush3.xpose.msk.msra.mxu1 %vm558_vm0, %v519_v34  ;;  %1788 = vmatprep.subr.msk.mxu0 %vm558_vm0, %v502_v35 }
  0x53   : > { %1828 = vmatprep.subr.msk.mxu1 %vm558_vm0, %v534_v36 }
  0x55   : > { %1789 = vmatpush3.xpose.msk.msra.mxu0 %vm558_vm0, %v486_v38 }
  0x56   : > { %1829 = vmatpush3.xpose.msk.msra.mxu1 %vm558_vm0, %v518_v39  ;;  %1726 = vmatprep.subr.msk.mxu0 %vm954_vm11, %v1651_v41 }
  0x57   : > { %1736 = vmatprep.subr.msk.mxu1 %vm954_vm11, %v1653_v42 }
  0x58   : > { %1791 = vmatmul.mubr.msk.f32.vlgmr.msra.gmra.mxu0 %vm558_vm0, %v2050_v0 }
  0x59   : > { %1831 = vmatmul.mubr.msk.f32.vlgmr.msra.gmra.mxu1 %vm558_vm0, %v2050_v0  ;;  %1792 = vmatprep.mubr.msk.f32.mxu0 %vm558_vm0, %v555_v43  ;;  %v556_v0 = vld [vmem:[%s2417_s3 + $0x10] sm:$0xff] }
  0x5a   : > { %1832 = vmatprep.mubr.msk.f32.mxu1 %vm558_vm0, %v555_v43  ;;  %1727 = vmatpush1.msk.msra.mxu0 %vm954_vm11, %v1650_v44 }
  0x5b   : > { %1737 = vmatpush1.msk.msra.mxu1 %vm954_vm11, %v1652_v45  ;;  %1728 = vmatprep.subr.msk.mxu0 %vm2269_vm5, %v1946_v49  ;;  %vm453_vm11 = vmor %vm396_vm13, %vm441_vm14 }
  0x5c   : > { %1738 = vmatprep.subr.msk.mxu1 %vm457_vm8, %v1946_v49  ;;  %1793 = vmatmul.mubr.msk.f32.gmra.mxu0 %vm558_vm0, %v555_v43  ;;  %vm450_vm5 = vmor %vm393_vm2, %vm438_vm3  ;;  %vm941_vm8 = vcmask 146432  }
  0x5d   : > { %1833 = vmatmul.mubr.msk.f32.gmra.mxu1 %vm558_vm0, %v555_v43  ;;  %1794 = vmatprep.mubr.msk.f32.mxu0 %vm558_vm0, %v556_v0 }
  0x5e   : > { %1834 = vmatprep.mubr.msk.f32.mxu1 %vm558_vm0, %v556_v0  ;;  %1729 = vmatpush1.msk.msra.mxu0 %vm2285_vm12, %v1946_v49 }
  0x5f   : > { %1739 = vmatpush1.msk.msra.mxu1 %vm2300_vm15, %v1946_v49  ;;  %1730 = vmatprep.subr.msk.mxu0 %vm451_vm1, %v1946_v49 }
  0x60   : > { %1740 = vmatprep.subr.msk.mxu1 %vm453_vm11, %v1946_v49  ;;  %1795 = vmatmul.mubr.msk.f32.gmra.mxu0 %vm558_vm0, %v556_v0 }
  0x61   : > { %1835 = vmatmul.mubr.msk.f32.gmra.mxu1 %vm558_vm0, %v556_v0  ;;  %1796 = vmatprep.mubr.msk.f32.mxu0 %vm558_vm0, %v557_v50 }
  0x62   : > { %1836 = vmatprep.mubr.msk.f32.mxu1 %vm558_vm0, %v557_v50  ;;  %1731 = vmatpush1.msk.msra.mxu0 %vm450_vm5, %v1946_v49 }
  0x63   : > { %1741 = vmatpush1.msk.msra.mxu1 %vm452_vm7, %v1946_v49 }
  0x64   : > { %1797 = vmatmul.mubr.msk.f32.gmra.mxu0 %vm558_vm0, %v557_v50 }
  0x65   : > { %1837 = vmatmul.mubr.msk.f32.gmra.mxu1 %vm558_vm0, %v557_v50  ;;  %1031 = vmatprep.mubr.f32.mxu0 %v1945_v40  ;;  %vm1215_vm0 = vcmask 261120  }
  0x66   : > { %1120 = vmatprep.mubr.f32.mxu1 %v1945_v40 }
  0x68   : > { %1732 = vmatmul.mubr.msk.f32.vlgmr.msra.gmra.mxu0 %vm941_vm8, %v550_v51 }
  0x69   : > { %1742 = vmatmul.mubr.msk.f32.vlgmr.msra.gmra.mxu1 %vm941_vm8, %v550_v51  ;;  %1037 = vmatprep.mubr.f32.mxu0 %v1945_v40 }
  0x6a   : > { %1126 = vmatprep.mubr.f32.mxu1 %v1945_v40 }
  0x6c   : > { %1733 = vmatmul.mubr.msk.f32.gmra.mxu0 %vm941_vm8, %v551_v52 }
  0x6d   : > { %1743 = vmatmul.mubr.msk.f32.gmra.mxu1 %vm941_vm8, %v551_v52  ;;  %1043 = vmatprep.mubr.f32.mxu0 %v1945_v40 }
  0x6e   : > { %1132 = vmatprep.mubr.f32.mxu1 %v1945_v40 }
  0x70   : > { %1734 = vmatmul.mubr.msk.f32.gmra.mxu0 %vm941_vm8, %v552_v53 }
  0x71   : > { %1744 = vmatmul.mubr.msk.f32.gmra.mxu1 %vm941_vm8, %v552_v53  ;;  %1049 = vmatprep.mubr.f32.mxu0 %v1945_v40 }
  0x72   : > { %1138 = vmatprep.mubr.f32.mxu1 %v1945_v40 }
  0x74   : > { %1735 = vmatmul.mubr.msk.f32.gmra.mxu0 %vm941_vm8, %v553_v54 }
  0x75   : > { %1745 = vmatmul.mubr.msk.f32.gmra.mxu1 %vm941_vm8, %v553_v54  ;;  %1286 = vmatprep.mubr.f32.mxu0 %v1945_v40 }
  0x76   : > { %1363 = vmatprep.mubr.f32.mxu1 %v1945_v40 }
  0x91   : > { %v1167_v18 = vpop.permute.xlu0 %1166  ;;  %v1157_v23 = vpop.permute.xlu1 %1156 }
  0x96   : > { %v1152_v51 = vpop.permute.xlu1 %1151 }
  0x97   : > { %v1162_v41 = vpop.permute.xlu0 %1161 }
 0x118   : > { %v829_v55 = vpop.f32.mrf.mxu0 }
 0x119   : > { %v918_v56 = vpop.f32.mrf.mxu1 }
 0x11a   : > { %v831_v57 = vpop.f32.mrf.mxu0 }
 0x11b   : > { %v920_v58 = vpop.f32.mrf.mxu1 }
 0x11c   : > { %v835_v59 = vpop.f32.mrf.mxu0 }
 0x11d   : > { %v924_v60 = vpop.f32.mrf.mxu1 }
 0x11e   : > { %v837_v61 = vpop.f32.mrf.mxu0 }
 0x11f   : > { %v926_v62 = vpop.f32.mrf.mxu1 }
 0x120   : > { %v841_v63 = vpop.f32.mrf.mxu0 }
 0x121   : > { %v930_v1 = vpop.f32.mrf.mxu1 }
 0x122   : > { %v843_v2 = vpop.f32.mrf.mxu0 }
 0x123   : > { %v932_v3 = vpop.f32.mrf.mxu1 }
 0x124   : > { %v847_v4 = vpop.f32.mrf.mxu0 }
 0x125   : > { %v936_v5 = vpop.f32.mrf.mxu1 }
 0x126   : > { %v849_v6 = vpop.f32.mrf.mxu0 }
 0x127   : > { %v938_v7 = vpop.f32.mrf.mxu1 }
 0x128   : > { %v1033_v8 = vpop.f32.mrf.mxu0 }
 0x129   : > { %v1122_v9 = vpop.f32.mrf.mxu1  ;;  %v1034_v0 = vadd.f32 %v1033_v8, %v829_v55 }
 0x12a   : > { %v1035_v10 = vpop.f32.mrf.mxu0  ;;  %v1123_v48 = vadd.f32 %v1122_v9, %v918_v56 }
 0x12b   : > { %v1124_v11 = vpop.f32.mrf.mxu1  ;;  %v1036_v28 = vadd.f32 %v1035_v10, %v831_v57 }
 0x12c   : > { %v1039_v12 = vpop.f32.mrf.mxu0  ;;  %v1125_v29 = vadd.f32 %v1124_v11, %v920_v58  ;;  %v1171_v55 = vadd.f32 %v1152_v51, %v1123_v48 }
 0x12d   : > { %v1128_v13 = vpop.f32.mrf.mxu1  ;;  %v1040_v38 = vadd.f32 %v1039_v12, %v835_v59 }
 0x12e   : > { %v1041_v14 = vpop.f32.mrf.mxu0  ;;  %v1129_v39 = vadd.f32 %v1128_v13, %v924_v60  ;;  %v1187_v12 = vmax.f32 %v1171_v55, 0.0  ;;  %v1201_v13 = vld [vmem:[%s2419_s5] sm:$0xff] }
 0x12f   : > { %v1130_v15 = vpop.f32.mrf.mxu1  ;;  %v1042_v34 = vadd.f32 %v1041_v14, %v837_v61  ;;  %v1173_v58 = vadd.f32 %v1157_v23, %v1040_v38  ;;  %v1202_v14 = vld [vmem:[%s2419_s5 + $0x8] sm:$0xff] }
 0x130   : > { %v1045_v16 = vpop.f32.mrf.mxu0  ;;  %v1131_v35 = vadd.f32 %v1130_v15, %v926_v62  ;;  %v1175_v61 = vadd.f32 %v1157_v23, %v1129_v39  ;;  %v1170_v62 = vadd.f32 %v1152_v51, %v1036_v28 }
 0x131   : > { %v1134_v17 = vpop.f32.mrf.mxu1  ;;  %v1046_v30 = vadd.f32 %v1045_v16, %v841_v63  ;;  %v1174_v52 = vadd.f32 %v1157_v23, %v1042_v34  ;;  %v1172_v63 = vadd.f32 %v1152_v51, %v1125_v29 }
 0x132   : > { %v1047_v19 = vpop.f32.mrf.mxu0  ;;  %v1135_v31 = vadd.f32 %v1134_v17, %v930_v1  ;;  %v1176_v53 = vadd.f32 %v1157_v23, %v1131_v35  ;;  %v1191_v8 = vmax.f32 %v1175_v61, 0.0  ;;  %v1186_v9 = vmax.f32 %v1170_v62, 0.0 }
 0x133   : > { %v1136_v20 = vpop.f32.mrf.mxu1  ;;  %v1048_v24 = vadd.f32 %v1047_v19, %v843_v2  ;;  %v1177_v49 = vadd.f32 %v1162_v41, %v1046_v30  ;;  %v1188_v10 = vmax.f32 %v1172_v63, 0.0 }
 0x134   : > { %v1051_v21 = vpop.f32.mrf.mxu0  ;;  %v1137_v25 = vadd.f32 %v1136_v20, %v932_v3  ;;  %v1179_v50 = vadd.f32 %v1162_v41, %v1135_v31  ;;  %v1169_v3 = vadd.f32 %v1152_v51, %v1034_v0 }
 0x135   : > { %v1140_v22 = vpop.f32.mrf.mxu1  ;;  %v1052_v26 = vadd.f32 %v1051_v21, %v847_v4  ;;  %v1178_v44 = vadd.f32 %v1162_v41, %v1048_v24  ;;  %v1193_v56 = vmax.f32 %v1177_v49, 0.0  ;;  %v1213_v21 = vpop.permute.xlu0 %1212 }
 0x136   : > { %v1141_v27 = vadd.f32 %v1140_v22, %v936_v5  ;;  %v1053_v32 = vpop.f32.mrf.mxu0  ;;  %v1180_v45 = vadd.f32 %v1162_v41, %v1137_v25  ;;  %v1195_v4 = vmax.f32 %v1179_v50, 0.0  ;;  %v1190_v5 = vmax.f32 %v1174_v52, 0.0  ;;  %v1208_v22 = vpop.permute.xlu1 %1207  ;;  %v1384_v41 = vld [vmem:[%s2421_s7] sm:$0xf] }
 0x137   : > { %v1142_v33 = vpop.f32.mrf.mxu1  ;;  %v1054_v36 = vadd.f32 %v1053_v32, %v849_v6  ;;  %v1181_v42 = vadd.f32 %v1167_v18, %v1052_v26  ;;  %v1194_v1 = vmax.f32 %v1178_v44, 0.0  ;;  %v1192_v6 = vmax.f32 %v1176_v53, 0.0 }
 0x138   : > { %v1143_v37 = vadd.f32 %v1142_v33, %v938_v7  ;;  %v1183_v43 = vadd.f32 %v1167_v18, %v1141_v27  ;;  %v1196_v2 = vmax.f32 %v1180_v45, 0.0  ;;  %v1189_v7 = vmax.f32 %v1173_v58, 0.0 }
 0x139   : > { %v1182_v46 = vadd.f32 %v1167_v18, %v1054_v36  ;;  %v1197_v59 = vmax.f32 %v1181_v42, 0.0  ;;  %v1185_v11 = vmax.f32 %v1169_v3, 0.0  ;;  %v1389_v44 = vpop.permute.xlu0 %1388 }
 0x13a   : > { %v1184_v47 = vadd.f32 %v1167_v18, %v1143_v37  ;;  %v1199_v60 = vmax.f32 %v1183_v43, 0.0 }
 0x13b   : > { %v1198_v54 = vmax.f32 %v1182_v46, 0.0 }
 0x13c   : > { %v1200_v57 = vmax.f32 %v1184_v47, 0.0 }
 0x13d   : > { %1246 = vmatprep.subr.mxu0 %v1198_v54 }
 0x13e   : > { %1323 = vmatprep.subr.mxu1 %v1200_v57  ;;  %1247 = vmatpush1.msra.mxu0 %v1197_v59 }
 0x13f   : > { %1324 = vmatpush1.msra.mxu1 %v1199_v60  ;;  %1248 = vmatprep.subr.mxu0 %v1194_v1 }
 0x140   : > { %1325 = vmatprep.subr.mxu1 %v1196_v2  ;;  %1249 = vmatpush1.msra.mxu0 %v1193_v56 }
 0x141   : > { %1326 = vmatpush1.msra.mxu1 %v1195_v4  ;;  %1250 = vmatprep.subr.mxu0 %v1190_v5 }
 0x142   : > { %1327 = vmatprep.subr.mxu1 %v1192_v6  ;;  %1251 = vmatpush1.msra.mxu0 %v1189_v7 }
 0x143   : > { %1328 = vmatpush1.msra.mxu1 %v1191_v8  ;;  %1252 = vmatprep.subr.mxu0 %v1186_v9 }
 0x144   : > { %1329 = vmatprep.subr.mxu1 %v1188_v10  ;;  %1253 = vmatpush1.msra.mxu0 %v1185_v11 }
 0x145   : > { %1330 = vmatpush1.msra.mxu1 %v1187_v12  ;;  %1746 = vmatmul.mubr.msk.f32.vlgmr.msra.gmra.mxu0 %vm1215_vm0, %v1201_v13 }
 0x146   : > { %1748 = vmatmul.mubr.msk.f32.vlgmr.msra.gmra.mxu1 %vm1215_vm0, %v1201_v13  ;;  %1292 = vmatprep.mubr.f32.mxu0 %v1945_v40 }
 0x147   : > { %1369 = vmatprep.mubr.f32.mxu1 %v1945_v40 }
 0x149   : > { %1747 = vmatmul.mubr.msk.f32.gmra.mxu0 %vm1215_vm0, %v1202_v14 }
 0x14a   : > { %1749 = vmatmul.mubr.msk.f32.gmra.mxu1 %vm1215_vm0, %v1202_v14  ;;  %1459 = vmatprep.mubr.f32.mxu0 %v1945_v40 }
 0x14b   : > { %1530 = vmatprep.mubr.f32.mxu1 %v1945_v40 }
 0x205   : > { %v1288_v15 = vpop.f32.mrf.mxu0 }
 0x206   : > { %v1365_v16 = vpop.f32.mrf.mxu1  ;;  %v1289_v31 = vadd.f32 %v1288_v15, %v1208_v22 }
 0x207   : > { %v1290_v17 = vpop.f32.mrf.mxu0  ;;  %v1366_v32 = vadd.f32 %v1365_v16, %v1208_v22 }
 0x208   : > { %v1367_v18 = vpop.f32.mrf.mxu1  ;;  %v1291_v27 = vadd.f32 %v1290_v17, %v1208_v22  ;;  %v1376_v38 = vmax.f32 %v1289_v31, 0.0 }
 0x209   : > { %v1294_v19 = vpop.f32.mrf.mxu0  ;;  %v1368_v28 = vadd.f32 %v1367_v18, %v1208_v22  ;;  %v1378_v39 = vmax.f32 %v1366_v32, 0.0 }
 0x20a   : > { %v1371_v20 = vpop.f32.mrf.mxu1  ;;  %v1295_v23 = vadd.f32 %v1294_v19, %v1213_v21  ;;  %v1377_v36 = vmax.f32 %v1291_v27, 0.0 }
 0x20b   : > { %v1372_v24 = vadd.f32 %v1371_v20, %v1213_v21  ;;  %v1296_v25 = vpop.f32.mrf.mxu0  ;;  %v1379_v37 = vmax.f32 %v1368_v28, 0.0 }
 0x20c   : > { %v1373_v26 = vpop.f32.mrf.mxu1  ;;  %v1297_v29 = vadd.f32 %v1296_v25, %v1213_v21  ;;  %v1380_v34 = vmax.f32 %v1295_v23, 0.0 }
 0x20d   : > { %v1374_v30 = vadd.f32 %v1373_v26, %v1213_v21  ;;  %v1382_v35 = vmax.f32 %v1372_v24, 0.0 }
 0x20e   : > { %v1381_v33 = vmax.f32 %v1297_v29, 0.0 }
 0x20f   : > { %v1383_v40 = vmax.f32 %v1374_v30, 0.0 }
 0x210   : > { %1423 = vmatprep.subr.mxu0 %v1381_v33 }
 0x211   : > { %1494 = vmatprep.subr.mxu1 %v1383_v40  ;;  %1424 = vmatpush1.msra.mxu0 %v1380_v34 }
 0x212   : > { %1495 = vmatpush1.msra.mxu1 %v1382_v35  ;;  %1425 = vmatprep.subr.mxu0 %v1377_v36 }
 0x213   : > { %1496 = vmatprep.subr.mxu1 %v1379_v37  ;;  %1426 = vmatpush1.msra.mxu0 %v1376_v38 }
 0x214   : > { %1497 = vmatpush1.msra.mxu1 %v1378_v39  ;;  %1750 = vmatmul.mubr.msk.f32.vlgmr.msra.gmra.mxu0 %vm1391_vm9, %v1384_v41 }
 0x215   : > { %1751 = vmatmul.mubr.msk.f32.vlgmr.msra.gmra.mxu1 %vm1391_vm9, %v1384_v41 }
 0x2d4   : > { %v1461_v42 = vpop.f32.mrf.mxu0 }
 0x2d5   : > { %v1532_v43 = vpop.f32.mrf.mxu1  ;;  %v1462_v47 = vadd.f32 %v1461_v42, %v1389_v44 }
 0x2d6   : > { %v1463_v45 = vpop.f32.mrf.mxu0  ;;  %v1533_v0 = vadd.f32 %v1532_v43, %v1389_v44 }
 0x2d7   : > { %v1534_v46 = vpop.f32.mrf.mxu1  ;;  %v1464_v48 = vadd.f32 %v1463_v45, %v1389_v44 }
 0x2d8   : > { %v1535_v49 = vadd.f32 %v1534_v46, %v1389_v44 }
 0x2d9   : > { %v1541_v50 = vcombine.low %v1462_v47, %v1464_v48 }
 0x2da   : > { %v1542_v51 = vcombine.low %v1533_v0, %v1535_v49 }
 0x2db   : > { %1545 = vst [vmem:[%s342_s21] sm:$0xff] %v1541_v50 }
 0x2dc   : > { %1546 = vst [vmem:[%s342_s21 + $0x8] sm:$0xff] %v1542_v51 }
 0x2dd   : > { %1895 = shalt.err (!%p1892_p4)
}
 0x2de   : > { %s1896_s22 = scalar_lea.hbm %s2379_s26, 256  ;;  %s1900_s21 = scalar_lea.hbm %s2423_s9, 512 }
 0x2df   : > { %p1897_p7 = scmp.ne.s32.totalorder %s2379_s26, %s1896_s22  ;;  %p1901_p10 = scmp.lt.s32.totalorder %s2379_s26, %s2423_s9 }
 0x2e0   : > { %p1902_p11 = scmp.lt.s32.totalorder %s1900_s21, %s1896_s22 }
 0x2e1   : > { %p1898_p8 = pnand %p1897_p7, %p2036_p5 }
 0x2e2   : > { %p1903_p12 = por %p1902_p11, %p1901_p10 }
 0x2e3   : > { %p1899_p9 = pneg %p1898_p8 }
 0x2e5   : > { %p1904_p13 = pnand %p1903_p12, %p1899_p9 }
 0x2e7   : > { %1907 = shalt.err (!%p1904_p13)
}
 0x2e8   : > { %1838 = dma.vmem_to_hbm [thread:$0]  (%p2036_p5), %s1563_s16, 256, %s2379_s26, %s1548_s27  }
 0x2e9 PF: > { %p1844_p0 = scmp.ge.s32.totalorder %s1942_s12, 2  ;;  %s1574_s28 = sand.u32 1, %s1930_s30  }
 0x2ea   : > { %s1575_s13 = scalar_lea.sflag [#allocation3], %s1574_s28 }
 0x2eb   : > { %p1841_p1 = pnand %p1844_p0, %p2040_p6 }
 0x2ed   : > { %p1842_p2 = pneg %p1841_p1 }
 0x2ef   : > { %1925 = dma.done.wait (%p1842_p2), %s1575_s13, 256  }
 0x2f0   : > { %1927 = vsyncadd (%p1842_p2), %s1575_s13, 4294967040  ;;  %p19_p3 = scmp.ge.s32.totalorder %s2023_s15, 4   ;;  %s2432_s30 = smov %s1934_s10 }
 0x2f1   : > { %s2433_s10 = smov %s1938_s11  ;;  %s2434_s11 = smov %s2034_s18 }
 0x2f2   : > { %s2435_s12 = smov %s2023_s15  ;;  %21 = sbr.rel (!%p19_p3) target bundleno = 3 (0x3), region = 94 }
 0x2f7   :  { %1580 = vsyncpa [#allocation3], 1 }
 0x2f8   :  { %1582 = vsyncpa [#allocation3 + $0x1], 1 }

</bundles_post_ra>
